<compile_context>
chip_gen: v7x
topology: tpu7x:2x2x1
jax: 0.10.0
libtpu: 0.0.40
codegen_flags: <defaults>
</compile_context>

<pallas_src>
import functools

import jax
import jax.numpy as jnp
from jax import lax
from jax.experimental import pallas as pl
from jax.experimental.pallas import tpu as pltpu


def _round_up(a, b):
    return ((a + b - 1) // b) * b


# ------------------------------ fused kernel --------------------------------

def _make_fused_kernel(layer_dims, out_pad):
    """Build the fused-network kernel.

    layer_dims: tuple of (K=n_lower, J=n_upper, M=bin_lower, L=bin_upper).
    Kernel ref order: (x_ref, [t_block, bias_flat] * n_layers, o_ref).
    Activations stay on-chip as one lane-packed (TB, units*bins) f32 slab.
    """

    def kernel(*refs):
        x_ref, o_ref = refs[0], refs[-1]
        act = x_ref[...].astype(jnp.float32)                    # (TB, K0*M0)
        tb = act.shape[0]

        for li, (K, J, M, L) in enumerate(layer_dims):
            t_blk = refs[1 + 2 * li][...]                        # (K*M, K*J*L) bf16
            bias = refs[2 + 2 * li][...]                         # (1, J*L)     f32
            G = J * L

            # One fused MXU contraction covering all (j, k) pairs at once.
            # bf16 operands, f32 accumulation (MXU-native on v5e/v6e/v7x).
            pw = lax.dot_general(
                act.astype(jnp.bfloat16), t_blk,
                (((1,), (0,)), ((), ())),
                preferred_element_type=jnp.float32)              # (TB, K*G)
            pw = jnp.clip(pw, 1e-15, 1e15)                       # torch.clamp
            logpw = jnp.log(pw)                                  # one EUP log

            # logsum[b, j*L+l] = sum_k logpw[b, k*G + j*L + l]
            logsum = logpw[:, 0:G]
            for k in range(1, K):                                # static, small
                logsum = logsum + logpw[:, k * G:(k + 1) * G]
            lsb = logsum + bias                                  # (TB, G)

            # Segmented (per-upper-unit) masked-max softmax over bins l,
            # computed directly on the packed slab (no slices / concatenate).
            lane = lax.broadcasted_iota(jnp.int32, (tb, G), 1)
            masks = [(lane >= j * L) & (lane < (j + 1) * L) for j in range(J)]

            neg_inf = jnp.float32(-jnp.inf)
            mx = jnp.zeros((tb, G), jnp.float32)
            for j in range(J):
                m_j = jnp.max(jnp.where(masks[j], lsb, neg_inf),
                              axis=-1, keepdims=True)            # (TB, 1)
                mx = jnp.where(masks[j], m_j, mx)

            e = jnp.exp(lsb - mx)                                # one EUP exp
            z = jnp.zeros((tb, G), jnp.float32)
            for j in range(J):
                z_j = jnp.sum(jnp.where(masks[j], e, 0.0),
                              axis=-1, keepdims=True)            # (TB, 1)
                z = jnp.where(masks[j], z_j, z)

            act = e * pl.reciprocal(z, approx=True)              # EUP recip (free slot)

        # Lane-dense store: pad the packed (TB, Jn*Ln) slab to 128 lanes so the
        # writeback uses unmasked full-width vector stores.
        gn = act.shape[-1]
        if out_pad > gn:
            act = jnp.concatenate(
                [act, jnp.zeros((tb, out_pad - gn), jnp.float32)], axis=-1)
        o_ref[...] = act.astype(o_ref.dtype)

    return kernel


# --------------------------- parameter-side tables ---------------------------

def _layer_tables(params, n_lower, n_upper, bin_lower, bin_upper):
    """Precompute (plain XLA, outside the batch loop) the per-layer tables.

    t_block[(k*M+m), (k*J*L + j*L + l)] = T[j,k,l,m]  (block-diagonal, bf16)
    bias_flat[0, j*L + l]               = B_sk[j, l]  (f32)
    """
    K, J, M, L = n_lower, n_upper, bin_lower, bin_upper
    si = jnp.arange(M, dtype=jnp.float32) / M                     # (M,)
    sk = jnp.arange(L, dtype=jnp.float32) / L                     # (L,)
    dsq = -(sk[:, None] - si[None, :]) ** 2                       # (L, M) = log(D)
    W = params["weights"].astype(jnp.float32)                     # (J, K)
    T = jnp.exp(W[:, :, None, None] * dsq[None, None])            # (J, K, L, M)
    Tt = jnp.transpose(T, (1, 3, 0, 2)).reshape(K, M, J * L)      # (K, M, J*L)
    eye = jnp.eye(K, dtype=jnp.float32)
    t_block = jnp.einsum("kmg,kq->kmqg", Tt, eye).reshape(K * M, K * J * L)
    t_block = t_block.astype(jnp.bfloat16)                        # MXU-native operand

    s0 = sk[None, :]                                              # (1, L)
    bias = (-params["quad_bias"] * (s0 - params["quad_lambda"]) ** 2
            - params["abs_bias"] * jnp.abs(s0 - params["abs_lambda"]))    # (J, L)
    bias_flat = bias.reshape(1, J * L).astype(jnp.float32)
    return t_block, bias_flat


# ------------------------------ network forward ------------------------------

def custom_net_forward(layers, x, *, max_batch_tile=1024):
    """layers: list of (params, n_lower, n_upper, bin_lower, bin_upper)."""
    B = x.shape[0]
    dims = tuple((nl, nu, bl, bu) for (_, nl, nu, bl, bu) in layers)
    K0, _, M0, _ = dims[0]
    _, Jn, _, Ln = dims[-1]
    Gn = Jn * Ln
    out_pad = _round_up(Gn, 128)                                  # lane-dense output

    # Batch tile: multiple of 8 sublanes; sized well under v7x's 64 MiB VMEM
    # (per-tile buffers + tables + f32 temporaries are ~1-2 MiB at TB=1024).
    TB = min(max_batch_tile, _round_up(B, 8))
    B_pad = _round_up(B, TB)

    x_flat = x.reshape(B, K0 * M0).astype(jnp.float32)            # free reshape
    if B_pad > B:
        x_flat = jnp.pad(x_flat, ((0, B_pad - B), (0, 0)))        # pad rows w/ zeros

    tables = []
    in_specs = [pl.BlockSpec((TB, K0 * M0), lambda i: (i, 0))]
    for params, nl, nu, bl, bu in layers:
        t_block, bias_flat = _layer_tables(params, nl, nu, bl, bu)
        tables += [t_block, bias_flat]
        # constant index_map -> table DMA'd once, stays resident in VMEM
        in_specs += [pl.BlockSpec(t_block.shape, lambda i: (0, 0)),
                     pl.BlockSpec(bias_flat.shape, lambda i: (0, 0))]

    kernel = _make_fused_kernel(dims, out_pad)
    out = pl.pallas_call(
        kernel,
        out_shape=jax.ShapeDtypeStruct((B_pad, out_pad), jnp.float32),
        grid=(B_pad // TB,),
        in_specs=in_specs,
        out_specs=pl.BlockSpec((TB, out_pad), lambda i: (i, 0)),
        compiler_params=pltpu.CompilerParams(
            dimension_semantics=("parallel",),
            vmem_limit_bytes=48 * 1024 * 1024),
    )(x_flat, *tables)

    # cheap XLA slice + row-major reshape (drops batch padding + lane padding)
    return out[:B, :Gn].reshape(B, Jn, Ln)


# --------------------------- parameters / network ----------------------------

def init_layer_params(key, n_lower, n_upper, weight_init=0.1):
    k1, k2, k3, k4, k5 = jax.random.split(key, 5)
    u = lambda k, shape, lo, hi: jax.random.uniform(k, shape, jnp.float32, lo, hi)
    return {
        "weights":     u(k1, (n_upper, n_lower), -weight_init, weight_init),
        "abs_bias":    u(k2, (n_upper, 1), -weight_init, weight_init),
        "quad_bias":   u(k3, (n_upper, 1), -weight_init, weight_init),
        "abs_lambda":  u(k4, (n_upper, 1), 0.0, 1.0),
        "quad_lambda": u(k5, (n_upper, 1), 0.0, 1.0),
    }


def build_custom_net(key, in_dim, num_hidden, hidden_dim, out_dim, bin_, hidden_bin):
    """Returns list of (params, n_lower, n_upper, bin_lower, bin_upper) in forward order."""
    layers = []
    if num_hidden == 0:
        (k0,) = jax.random.split(key, 1)
        layers.append((init_layer_params(k0, in_dim, out_dim), in_dim, out_dim, bin_, bin_))
    else:
        keys = jax.random.split(key, num_hidden + 1)
        layers.append((init_layer_params(keys[0], in_dim, hidden_dim),
                       in_dim, hidden_dim, bin_, hidden_bin))
        for i in range(num_hidden - 1):
            layers.append((init_layer_params(keys[1 + i], hidden_dim, hidden_dim),
                           hidden_dim, hidden_dim, hidden_bin, hidden_bin))
        layers.append((init_layer_params(keys[num_hidden], hidden_dim, out_dim),
                       hidden_dim, out_dim, hidden_bin, bin_))
    return layers


# ------------------------------ pure-JAX reference ---------------------------

def custom_layer_ref(x, params, n_lower, n_upper, bin_lower, bin_upper):
    B = x.shape[0]
    P = x.reshape(B, n_lower, bin_lower)
    si = jnp.arange(bin_lower, dtype=jnp.float32) / bin_lower
    sk = jnp.arange(bin_upper, dtype=jnp.float32) / bin_upper
    d_base = jnp.exp(-(sk[:, None] - si[None, :]) ** 2)
    T = d_base[None, None] ** params["weights"][:, :, None, None]    # (J, K, L, M)
    Pw = jnp.einsum("jklm,bkm->bjkl", T, P, precision=jax.lax.Precision.HIGHEST)
    Pw = jnp.clip(Pw, 1e-15, 1e15)
    logsum = jnp.sum(jnp.log(Pw), axis=2)                            # (B, J, L)
    s0 = sk[None, :]
    b_sk = (-params["quad_bias"] * (s0 - params["quad_lambda"]) ** 2
            - params["abs_bias"] * jnp.abs(s0 - params["abs_lambda"]))
    lsb = logsum + b_sk[None]
    m = jnp.max(lsb, axis=2, keepdims=True)
    e = jnp.exp(lsb - m)
    return e / jnp.sum(e, axis=2, keepdims=True)


# ----------------------------------- main ------------------------------------

if __name__ == "__main__":
    in_dim, num_hidden, hidden_dim, out_dim = 4, 1, 4, 3
    bin_, hidden_bin = 8, 8
    batch = 2

    key = jax.random.PRNGKey(0)
    kp, kx = jax.random.split(key)
    layers = build_custom_net(kp, in_dim, num_hidden, hidden_dim, out_dim, bin_, hidden_bin)

    # positive inputs (each lower unit carries a distribution over bins)
    x = jax.random.uniform(kx, (batch, in_dim, bin_), jnp.float32, 0.1, 1.0)

    fwd = jax.jit(functools.partial(custom_net_forward, layers))
    y = jax.block_until_ready(fwd(x))

    # correctness check against a plain-JAX (Precision.HIGHEST) reference of the
    # PyTorch forward.  Tolerance is slightly relaxed vs. 1e-3 because the
    # kernel uses bf16 MXU operands (review-requested) + approx EUP reciprocal;
    # outputs are probabilities, so this is still a tight check.
    xr = x
    for params, nl, nu, bl, bu in layers:
        xr = custom_layer_ref(xr, params, nl, nu, bl, bu)

    assert y.shape == (batch, out_dim, bin_), y.shape
    assert bool(jnp.allclose(y, xr, rtol=5e-3, atol=2e-3)), "mismatch vs reference"
    print("KERNEL_OK")
</pallas_src>

<mosaic_0001>
module attributes {stable_mosaic.version = 11 : i64} {
  func.func @kernel(%arg0: i32, %arg1: memref<8x32xf32, #tpu.memory_space<vmem>>, %arg2: memref<32x128xbf16, #tpu.memory_space<vmem>>, %arg3: memref<1x32xf32, #tpu.memory_space<vmem>>, %arg4: memref<32x96xbf16, #tpu.memory_space<vmem>>, %arg5: memref<1x24xf32, #tpu.memory_space<vmem>>, %arg6: memref<8x128xf32, #tpu.memory_space<vmem>>) attributes {dimension_semantics = [#tpu.dimension_semantics<parallel>], iteration_bounds = array<i64: 1>, scalar_prefetch = 0 : i64, scratch_operands = 0 : i64, tpu.core_type = #tpu.core_type<tc>, window_params = [{transform_indices = @transform_0, window_bounds = array<i64: 8, 32>}, {pipeline_mode = #tpu.pipeline_mode<synchronous>, transform_indices = @transform_1, window_bounds = array<i64: 32, 128>}, {pipeline_mode = #tpu.pipeline_mode<synchronous>, transform_indices = @transform_2, window_bounds = array<i64: 1, 32>}, {pipeline_mode = #tpu.pipeline_mode<synchronous>, transform_indices = @transform_3, window_bounds = array<i64: 32, 96>}, {pipeline_mode = #tpu.pipeline_mode<synchronous>, transform_indices = @transform_4, window_bounds = array<i64: 1, 24>}, {transform_indices = @transform_5, window_bounds = array<i64: 8, 128>}]} {
    %c0 = arith.constant 0 : index
    %c0_0 = arith.constant 0 : index
    %0 = vector.load %arg1[%c0, %c0_0] : memref<8x32xf32, #tpu.memory_space<vmem>>, vector<8x32xf32>
    %c0_1 = arith.constant 0 : index
    %c0_2 = arith.constant 0 : index
    %1 = vector.load %arg2[%c0_1, %c0_2] : memref<32x128xbf16, #tpu.memory_space<vmem>>, vector<32x128xbf16>
    %c0_3 = arith.constant 0 : index
    %c0_4 = arith.constant 0 : index
    %2 = vector.load %arg3[%c0_3, %c0_4] : memref<1x32xf32, #tpu.memory_space<vmem>>, vector<1x32xf32>
    %3 = arith.truncf %0 : vector<8x32xf32> to vector<8x32xbf16>
    %cst = arith.constant dense<0.000000e+00> : vector<8x128xf32>
    %4 = tpu.matmul %3, %1, %cst {dimension_numbers = #tpu.dot_dimension_numbers<[1], [0], [0], [1], [0, 0, 1, 1], [], []>} : vector<8x32xbf16>, vector<32x128xbf16>, vector<8x128xf32> -> vector<8x128xf32>
    %cst_5 = arith.constant 1.000000e-15 : f32
    %cst_6 = arith.constant 9.99999986E+14 : f32
    %5 = vector.broadcast %cst_5 : f32 to vector<8x128xf32>
    %6 = arith.maximumf %5, %4 : vector<8x128xf32>
    %7 = vector.broadcast %cst_6 : f32 to vector<8x128xf32>
    %8 = arith.minimumf %7, %6 : vector<8x128xf32>
    %9 = math.log %8 : vector<8x128xf32>
    %10 = vector.extract_strided_slice %9 {offsets = [0, 0], sizes = [8, 32], strides = [1, 1]} : vector<8x128xf32> to vector<8x32xf32>
    %11 = vector.extract_strided_slice %9 {offsets = [0, 32], sizes = [8, 32], strides = [1, 1]} : vector<8x128xf32> to vector<8x32xf32>
    %12 = arith.addf %10, %11 : vector<8x32xf32>
    %13 = vector.extract_strided_slice %9 {offsets = [0, 64], sizes = [8, 32], strides = [1, 1]} : vector<8x128xf32> to vector<8x32xf32>
    %14 = arith.addf %12, %13 : vector<8x32xf32>
    %15 = vector.extract_strided_slice %9 {offsets = [0, 96], sizes = [8, 32], strides = [1, 1]} : vector<8x128xf32> to vector<8x32xf32>
    %16 = arith.addf %14, %15 : vector<8x32xf32>
    %17 = vector.broadcast %2 : vector<1x32xf32> to vector<8x32xf32>
    %18 = arith.addf %16, %17 : vector<8x32xf32>
    %19 = tpu.iota {dimensions = array<i32: 1>} : vector<8x32xi32>
    %c0_i32 = arith.constant 0 : i32
    %20 = vector.broadcast %c0_i32 : i32 to vector<8x32xi32>
    %21 = arith.cmpi sge, %19, %20 : vector<8x32xi32>
    %c8_i32 = arith.constant 8 : i32
    %22 = vector.broadcast %c8_i32 : i32 to vector<8x32xi32>
    %23 = arith.cmpi slt, %19, %22 : vector<8x32xi32>
    %24 = arith.andi %21, %23 : vector<8x32xi1>
    %c8_i32_7 = arith.constant 8 : i32
    %25 = vector.broadcast %c8_i32_7 : i32 to vector<8x32xi32>
    %26 = arith.cmpi sge, %19, %25 : vector<8x32xi32>
    %c16_i32 = arith.constant 16 : i32
    %27 = vector.broadcast %c16_i32 : i32 to vector<8x32xi32>
    %28 = arith.cmpi slt, %19, %27 : vector<8x32xi32>
    %29 = arith.andi %26, %28 : vector<8x32xi1>
    %c16_i32_8 = arith.constant 16 : i32
    %30 = vector.broadcast %c16_i32_8 : i32 to vector<8x32xi32>
    %31 = arith.cmpi sge, %19, %30 : vector<8x32xi32>
    %c24_i32 = arith.constant 24 : i32
    %32 = vector.broadcast %c24_i32 : i32 to vector<8x32xi32>
    %33 = arith.cmpi slt, %19, %32 : vector<8x32xi32>
    %34 = arith.andi %31, %33 : vector<8x32xi1>
    %c24_i32_9 = arith.constant 24 : i32
    %35 = vector.broadcast %c24_i32_9 : i32 to vector<8x32xi32>
    %36 = arith.cmpi sge, %19, %35 : vector<8x32xi32>
    %c32_i32 = arith.constant 32 : i32
    %37 = vector.broadcast %c32_i32 : i32 to vector<8x32xi32>
    %38 = arith.cmpi slt, %19, %37 : vector<8x32xi32>
    %39 = arith.andi %36, %38 : vector<8x32xi1>
    %cst_10 = arith.constant 0.000000e+00 : f32
    %40 = vector.broadcast %cst_10 : f32 to vector<8x32xf32>
    %cst_11 = arith.constant 0xFF800000 : f32
    %41 = vector.broadcast %cst_11 : f32 to vector<8x32xf32>
    %42 = arith.select %24, %18, %41 : vector<8x32xi1>, vector<8x32xf32>
    %cst_12 = arith.constant dense<0xFF800000> : vector<8xf32>
    %43 = vector.multi_reduction <maximumf>, %42, %cst_12 [1] : vector<8x32xf32> to vector<8xf32>
    %44 = vector.shape_cast %43 : vector<8xf32> to vector<8x1xf32>
    %45 = vector.shape_cast %44 : vector<8x1xf32> to vector<8x1xf32>
    %46 = vector.broadcast %45 : vector<8x1xf32> to vector<8x32xf32>
    %47 = arith.select %24, %46, %40 : vector<8x32xi1>, vector<8x32xf32>
    %cst_13 = arith.constant 0xFF800000 : f32
    %48 = vector.broadcast %cst_13 : f32 to vector<8x32xf32>
    %49 = arith.select %29, %18, %48 : vector<8x32xi1>, vector<8x32xf32>
    %cst_14 = arith.constant dense<0xFF800000> : vector<8xf32>
    %50 = vector.multi_reduction <maximumf>, %49, %cst_14 [1] : vector<8x32xf32> to vector<8xf32>
    %51 = vector.shape_cast %50 : vector<8xf32> to vector<8x1xf32>
    %52 = vector.shape_cast %51 : vector<8x1xf32> to vector<8x1xf32>
    %53 = vector.broadcast %52 : vector<8x1xf32> to vector<8x32xf32>
    %54 = arith.select %29, %53, %47 : vector<8x32xi1>, vector<8x32xf32>
    %cst_15 = arith.constant 0xFF800000 : f32
    %55 = vector.broadcast %cst_15 : f32 to vector<8x32xf32>
    %56 = arith.select %34, %18, %55 : vector<8x32xi1>, vector<8x32xf32>
    %cst_16 = arith.constant dense<0xFF800000> : vector<8xf32>
    %57 = vector.multi_reduction <maximumf>, %56, %cst_16 [1] : vector<8x32xf32> to vector<8xf32>
    %58 = vector.shape_cast %57 : vector<8xf32> to vector<8x1xf32>
    %59 = vector.shape_cast %58 : vector<8x1xf32> to vector<8x1xf32>
    %60 = vector.broadcast %59 : vector<8x1xf32> to vector<8x32xf32>
    %61 = arith.select %34, %60, %54 : vector<8x32xi1>, vector<8x32xf32>
    %cst_17 = arith.constant 0xFF800000 : f32
    %62 = vector.broadcast %cst_17 : f32 to vector<8x32xf32>
    %63 = arith.select %39, %18, %62 : vector<8x32xi1>, vector<8x32xf32>
    %cst_18 = arith.constant dense<0xFF800000> : vector<8xf32>
    %64 = vector.multi_reduction <maximumf>, %63, %cst_18 [1] : vector<8x32xf32> to vector<8xf32>
    %65 = vector.shape_cast %64 : vector<8xf32> to vector<8x1xf32>
    %66 = vector.shape_cast %65 : vector<8x1xf32> to vector<8x1xf32>
    %67 = vector.broadcast %66 : vector<8x1xf32> to vector<8x32xf32>
    %68 = arith.select %39, %67, %61 : vector<8x32xi1>, vector<8x32xf32>
    %69 = arith.subf %18, %68 : vector<8x32xf32>
    %70 = math.exp %69 : vector<8x32xf32>
    %cst_19 = arith.constant 0.000000e+00 : f32
    %71 = vector.broadcast %cst_19 : f32 to vector<8x32xf32>
    %cst_20 = arith.constant 0.000000e+00 : f32
    %72 = vector.broadcast %cst_20 : f32 to vector<8x32xf32>
    %73 = arith.select %24, %70, %72 : vector<8x32xi1>, vector<8x32xf32>
    %cst_21 = arith.constant dense<0.000000e+00> : vector<8xf32>
    %74 = vector.multi_reduction <add>, %73, %cst_21 [1] : vector<8x32xf32> to vector<8xf32>
    %75 = vector.shape_cast %74 : vector<8xf32> to vector<8x1xf32>
    %76 = vector.shape_cast %75 : vector<8x1xf32> to vector<8x1xf32>
    %77 = vector.broadcast %76 : vector<8x1xf32> to vector<8x32xf32>
    %78 = arith.select %24, %77, %71 : vector<8x32xi1>, vector<8x32xf32>
    %cst_22 = arith.constant 0.000000e+00 : f32
    %79 = vector.broadcast %cst_22 : f32 to vector<8x32xf32>
    %80 = arith.select %29, %70, %79 : vector<8x32xi1>, vector<8x32xf32>
    %cst_23 = arith.constant dense<0.000000e+00> : vector<8xf32>
    %81 = vector.multi_reduction <add>, %80, %cst_23 [1] : vector<8x32xf32> to vector<8xf32>
    %82 = vector.shape_cast %81 : vector<8xf32> to vector<8x1xf32>
    %83 = vector.shape_cast %82 : vector<8x1xf32> to vector<8x1xf32>
    %84 = vector.broadcast %83 : vector<8x1xf32> to vector<8x32xf32>
    %85 = arith.select %29, %84, %78 : vector<8x32xi1>, vector<8x32xf32>
    %cst_24 = arith.constant 0.000000e+00 : f32
    %86 = vector.broadcast %cst_24 : f32 to vector<8x32xf32>
    %87 = arith.select %34, %70, %86 : vector<8x32xi1>, vector<8x32xf32>
    %cst_25 = arith.constant dense<0.000000e+00> : vector<8xf32>
    %88 = vector.multi_reduction <add>, %87, %cst_25 [1] : vector<8x32xf32> to vector<8xf32>
    %89 = vector.shape_cast %88 : vector<8xf32> to vector<8x1xf32>
    %90 = vector.shape_cast %89 : vector<8x1xf32> to vector<8x1xf32>
    %91 = vector.broadcast %90 : vector<8x1xf32> to vector<8x32xf32>
    %92 = arith.select %34, %91, %85 : vector<8x32xi1>, vector<8x32xf32>
    %cst_26 = arith.constant 0.000000e+00 : f32
    %93 = vector.broadcast %cst_26 : f32 to vector<8x32xf32>
    %94 = arith.select %39, %70, %93 : vector<8x32xi1>, vector<8x32xf32>
    %cst_27 = arith.constant dense<0.000000e+00> : vector<8xf32>
    %95 = vector.multi_reduction <add>, %94, %cst_27 [1] : vector<8x32xf32> to vector<8xf32>
    %96 = vector.shape_cast %95 : vector<8xf32> to vector<8x1xf32>
    %97 = vector.shape_cast %96 : vector<8x1xf32> to vector<8x1xf32>
    %98 = vector.broadcast %97 : vector<8x1xf32> to vector<8x32xf32>
    %99 = arith.select %39, %98, %92 : vector<8x32xi1>, vector<8x32xf32>
    %100 = tpu.reciprocal %99 {approx = true} : vector<8x32xf32> -> vector<8x32xf32>
    %101 = arith.mulf %70, %100 : vector<8x32xf32>
    %c0_28 = arith.constant 0 : index
    %c0_29 = arith.constant 0 : index
    %102 = vector.load %arg4[%c0_28, %c0_29] : memref<32x96xbf16, #tpu.memory_space<vmem>>, vector<32x96xbf16>
    %c0_30 = arith.constant 0 : index
    %c0_31 = arith.constant 0 : index
    %103 = vector.load %arg5[%c0_30, %c0_31] : memref<1x24xf32, #tpu.memory_space<vmem>>, vector<1x24xf32>
    %104 = arith.truncf %101 : vector<8x32xf32> to vector<8x32xbf16>
    %cst_32 = arith.constant dense<0.000000e+00> : vector<8x96xf32>
    %105 = tpu.matmul %104, %102, %cst_32 {dimension_numbers = #tpu.dot_dimension_numbers<[1], [0], [0], [1], [0, 0, 1, 1], [], []>} : vector<8x32xbf16>, vector<32x96xbf16>, vector<8x96xf32> -> vector<8x96xf32>
    %cst_33 = arith.constant 1.000000e-15 : f32
    %cst_34 = arith.constant 9.99999986E+14 : f32
    %106 = vector.broadcast %cst_33 : f32 to vector<8x96xf32>
    %107 = arith.maximumf %106, %105 : vector<8x96xf32>
    %108 = vector.broadcast %cst_34 : f32 to vector<8x96xf32>
    %109 = arith.minimumf %108, %107 : vector<8x96xf32>
    %110 = math.log %109 : vector<8x96xf32>
    %111 = vector.extract_strided_slice %110 {offsets = [0, 0], sizes = [8, 24], strides = [1, 1]} : vector<8x96xf32> to vector<8x24xf32>
    %112 = vector.extract_strided_slice %110 {offsets = [0, 24], sizes = [8, 24], strides = [1, 1]} : vector<8x96xf32> to vector<8x24xf32>
    %113 = arith.addf %111, %112 : vector<8x24xf32>
    %114 = vector.extract_strided_slice %110 {offsets = [0, 48], sizes = [8, 24], strides = [1, 1]} : vector<8x96xf32> to vector<8x24xf32>
    %115 = arith.addf %113, %114 : vector<8x24xf32>
    %116 = vector.extract_strided_slice %110 {offsets = [0, 72], sizes = [8, 24], strides = [1, 1]} : vector<8x96xf32> to vector<8x24xf32>
    %117 = arith.addf %115, %116 : vector<8x24xf32>
    %118 = vector.broadcast %103 : vector<1x24xf32> to vector<8x24xf32>
    %119 = arith.addf %117, %118 : vector<8x24xf32>
    %120 = tpu.iota {dimensions = array<i32: 1>} : vector<8x24xi32>
    %c0_i32_35 = arith.constant 0 : i32
    %121 = vector.broadcast %c0_i32_35 : i32 to vector<8x24xi32>
    %122 = arith.cmpi sge, %120, %121 : vector<8x24xi32>
    %c8_i32_36 = arith.constant 8 : i32
    %123 = vector.broadcast %c8_i32_36 : i32 to vector<8x24xi32>
    %124 = arith.cmpi slt, %120, %123 : vector<8x24xi32>
    %125 = arith.andi %122, %124 : vector<8x24xi1>
    %c8_i32_37 = arith.constant 8 : i32
    %126 = vector.broadcast %c8_i32_37 : i32 to vector<8x24xi32>
    %127 = arith.cmpi sge, %120, %126 : vector<8x24xi32>
    %c16_i32_38 = arith.constant 16 : i32
    %128 = vector.broadcast %c16_i32_38 : i32 to vector<8x24xi32>
    %129 = arith.cmpi slt, %120, %128 : vector<8x24xi32>
    %130 = arith.andi %127, %129 : vector<8x24xi1>
    %c16_i32_39 = arith.constant 16 : i32
    %131 = vector.broadcast %c16_i32_39 : i32 to vector<8x24xi32>
    %132 = arith.cmpi sge, %120, %131 : vector<8x24xi32>
    %c24_i32_40 = arith.constant 24 : i32
    %133 = vector.broadcast %c24_i32_40 : i32 to vector<8x24xi32>
    %134 = arith.cmpi slt, %120, %133 : vector<8x24xi32>
    %135 = arith.andi %132, %134 : vector<8x24xi1>
    %cst_41 = arith.constant 0.000000e+00 : f32
    %136 = vector.broadcast %cst_41 : f32 to vector<8x24xf32>
    %cst_42 = arith.constant 0xFF800000 : f32
    %137 = vector.broadcast %cst_42 : f32 to vector<8x24xf32>
    %138 = arith.select %125, %119, %137 : vector<8x24xi1>, vector<8x24xf32>
    %cst_43 = arith.constant dense<0xFF800000> : vector<8xf32>
    %139 = vector.multi_reduction <maximumf>, %138, %cst_43 [1] : vector<8x24xf32> to vector<8xf32>
    %140 = vector.shape_cast %139 : vector<8xf32> to vector<8x1xf32>
    %141 = vector.shape_cast %140 : vector<8x1xf32> to vector<8x1xf32>
    %142 = vector.broadcast %141 : vector<8x1xf32> to vector<8x24xf32>
    %143 = arith.select %125, %142, %136 : vector<8x24xi1>, vector<8x24xf32>
    %cst_44 = arith.constant 0xFF800000 : f32
    %144 = vector.broadcast %cst_44 : f32 to vector<8x24xf32>
    %145 = arith.select %130, %119, %144 : vector<8x24xi1>, vector<8x24xf32>
    %cst_45 = arith.constant dense<0xFF800000> : vector<8xf32>
    %146 = vector.multi_reduction <maximumf>, %145, %cst_45 [1] : vector<8x24xf32> to vector<8xf32>
    %147 = vector.shape_cast %146 : vector<8xf32> to vector<8x1xf32>
    %148 = vector.shape_cast %147 : vector<8x1xf32> to vector<8x1xf32>
    %149 = vector.broadcast %148 : vector<8x1xf32> to vector<8x24xf32>
    %150 = arith.select %130, %149, %143 : vector<8x24xi1>, vector<8x24xf32>
    %cst_46 = arith.constant 0xFF800000 : f32
    %151 = vector.broadcast %cst_46 : f32 to vector<8x24xf32>
    %152 = arith.select %135, %119, %151 : vector<8x24xi1>, vector<8x24xf32>
    %cst_47 = arith.constant dense<0xFF800000> : vector<8xf32>
    %153 = vector.multi_reduction <maximumf>, %152, %cst_47 [1] : vector<8x24xf32> to vector<8xf32>
    %154 = vector.shape_cast %153 : vector<8xf32> to vector<8x1xf32>
    %155 = vector.shape_cast %154 : vector<8x1xf32> to vector<8x1xf32>
    %156 = vector.broadcast %155 : vector<8x1xf32> to vector<8x24xf32>
    %157 = arith.select %135, %156, %150 : vector<8x24xi1>, vector<8x24xf32>
    %158 = arith.subf %119, %157 : vector<8x24xf32>
    %159 = math.exp %158 : vector<8x24xf32>
    %cst_48 = arith.constant 0.000000e+00 : f32
    %160 = vector.broadcast %cst_48 : f32 to vector<8x24xf32>
    %cst_49 = arith.constant 0.000000e+00 : f32
    %161 = vector.broadcast %cst_49 : f32 to vector<8x24xf32>
    %162 = arith.select %125, %159, %161 : vector<8x24xi1>, vector<8x24xf32>
    %cst_50 = arith.constant dense<0.000000e+00> : vector<8xf32>
    %163 = vector.multi_reduction <add>, %162, %cst_50 [1] : vector<8x24xf32> to vector<8xf32>
    %164 = vector.shape_cast %163 : vector<8xf32> to vector<8x1xf32>
    %165 = vector.shape_cast %164 : vector<8x1xf32> to vector<8x1xf32>
    %166 = vector.broadcast %165 : vector<8x1xf32> to vector<8x24xf32>
    %167 = arith.select %125, %166, %160 : vector<8x24xi1>, vector<8x24xf32>
    %cst_51 = arith.constant 0.000000e+00 : f32
    %168 = vector.broadcast %cst_51 : f32 to vector<8x24xf32>
    %169 = arith.select %130, %159, %168 : vector<8x24xi1>, vector<8x24xf32>
    %cst_52 = arith.constant dense<0.000000e+00> : vector<8xf32>
    %170 = vector.multi_reduction <add>, %169, %cst_52 [1] : vector<8x24xf32> to vector<8xf32>
    %171 = vector.shape_cast %170 : vector<8xf32> to vector<8x1xf32>
    %172 = vector.shape_cast %171 : vector<8x1xf32> to vector<8x1xf32>
    %173 = vector.broadcast %172 : vector<8x1xf32> to vector<8x24xf32>
    %174 = arith.select %130, %173, %167 : vector<8x24xi1>, vector<8x24xf32>
    %cst_53 = arith.constant 0.000000e+00 : f32
    %175 = vector.broadcast %cst_53 : f32 to vector<8x24xf32>
    %176 = arith.select %135, %159, %175 : vector<8x24xi1>, vector<8x24xf32>
    %cst_54 = arith.constant dense<0.000000e+00> : vector<8xf32>
    %177 = vector.multi_reduction <add>, %176, %cst_54 [1] : vector<8x24xf32> to vector<8xf32>
    %178 = vector.shape_cast %177 : vector<8xf32> to vector<8x1xf32>
    %179 = vector.shape_cast %178 : vector<8x1xf32> to vector<8x1xf32>
    %180 = vector.broadcast %179 : vector<8x1xf32> to vector<8x24xf32>
    %181 = arith.select %135, %180, %174 : vector<8x24xi1>, vector<8x24xf32>
    %182 = tpu.reciprocal %181 {approx = true} : vector<8x24xf32> -> vector<8x24xf32>
    %183 = arith.mulf %159, %182 : vector<8x24xf32>
    %cst_55 = arith.constant 0.000000e+00 : f32
    %184 = vector.broadcast %cst_55 : f32 to vector<8x104xf32>
    %185 = tpu.concatenate %183, %184 in 1 : vector<8x24xf32>, vector<8x104xf32> -> vector<8x128xf32>
    %c0_56 = arith.constant 0 : index
    %c0_57 = arith.constant 0 : index
    %186 = vector.load %arg6[%c0_56, %c0_57] : memref<8x128xf32, #tpu.memory_space<vmem>>, vector<8x128xf32>
    tpu.vector_store %arg6[%c0_56, %c0_57], %185 {strides = array<i32>} : memref<8x128xf32, #tpu.memory_space<vmem>>, vector<8x128xf32>,
    return
  }
  func.func @transform_0(%arg0: i32) -> (i32, i32) {
    %c0_i32 = arith.constant 0 : i32
    %c0_i32_0 = arith.constant 0 : i32
    return %arg0, %c0_i32 : i32, i32
  }
  func.func @transform_1(%arg0: i32) -> (i32, i32) {
    %c0_i32 = arith.constant 0 : i32
    %c0_i32_0 = arith.constant 0 : i32
    %c0_i32_1 = arith.constant 0 : i32
    return %c0_i32, %c0_i32_0 : i32, i32
  }
  func.func @transform_2(%arg0: i32) -> (i32, i32) {
    %c0_i32 = arith.constant 0 : i32
    %c0_i32_0 = arith.constant 0 : i32
    %c0_i32_1 = arith.constant 0 : i32
    return %c0_i32, %c0_i32_0 : i32, i32
  }
  func.func @transform_3(%arg0: i32) -> (i32, i32) {
    %c0_i32 = arith.constant 0 : i32
    %c0_i32_0 = arith.constant 0 : i32
    %c0_i32_1 = arith.constant 0 : i32
    return %c0_i32, %c0_i32_0 : i32, i32
  }
  func.func @transform_4(%arg0: i32) -> (i32, i32) {
    %c0_i32 = arith.constant 0 : i32
    %c0_i32_0 = arith.constant 0 : i32
    %c0_i32_1 = arith.constant 0 : i32
    return %c0_i32, %c0_i32_0 : i32, i32
  }
  func.func @transform_5(%arg0: i32) -> (i32, i32) {
    %c0_i32 = arith.constant 0 : i32
    %c0_i32_0 = arith.constant 0 : i32
    return %arg0, %c0_i32 : i32, i32
  }
}

</mosaic_0001>

<bundles_post_ra>
// kernel: custom_net_forward.1
= control target key start
LH: loop header
LB: loop body
LE: loop exit
PB: predicated region body
PF: predicated region fallthrough
CT: control target
= control target key end

     0   :  { %v348_v0 = vmov 0.0   ;;  %vm349_vm0 = vmmov 0   ;;  %vm40_vm1 = vcmask 261120   ;;  %s351_s24 = smov 96   ;;  %v108_v13 = vlaneseq  ;;  %s354_s30 = smov 104   ;;  %s510_s1 = inlined_call_operand.vmem [shape: bf16[32,128], index: 1, kind: input, shape index: {}]   ;;  %s511_s0 = inlined_call_operand.vmem [shape: f32[8,32], index: 0, kind: input, shape index: {}]   ;;  %s512_s2 = inlined_call_operand.vmem [shape: f32[1,32], index: 2, kind: input, shape index: {}]   ;;  %s513_s3 = inlined_call_operand.vmem [shape: bf16[32,96], index: 3, kind: input, shape index: {}]   ;;  %s514_s4 = inlined_call_operand.vmem [shape: f32[1,24], index: 4, kind: input, shape index: {}]   ;;  %s515_s5 = inlined_call_operand.vmem [shape: f32[8,128], index: 5, kind: output, shape index: {}]  }
   0x1   :  { %308 = vmatprep.subr.bf16.mxu0 %v348_v0  ;;  %v332_v1 = vld [vmem:[%s510_s1] sm:$0xff]   ;;  %312 = vmatprep.mubr.msk.bf16.mxu0 %vm349_vm0, %v348_v0  ;;  %v333_v2 = vld [vmem:[%s510_s1 + $0x8] sm:$0xff]   ;;  %s350_s1 = smov 32   ;;  %s355_s6 = smov 56   ;;  %vm253_vm12 = vcmask 195584  }
   0x2   :  { %316 = vmatprep.subr.bf16.mxu1 %v348_v0  ;;  %320 = vmatprep.mubr.msk.bf16.mxu1 %vm349_vm0, %v348_v0  ;;  %v21_v3 = vld [vmem:[%s511_s0] sm:$0xff]  ;;  %s352_s0 = smov 64   ;;  %v401_v15 = vand.u32 127, %v108_v13  ;;  %v335_v54 = vld [vmem:[%s513_s3 + $0x8] sm:$0xff]  }
   0x3   :  { %309 = vmatpush3.bf16.msra.mxu0 %v332_v1  ;;  %v27_v4 = vpack.c.bf16 %v21_v3, %v21_v3  ;;  %v297_v20 = vld [vmem:[%s512_s2] ss:$0 sm:$0xff] }
   0x4   :  { %310 = vmatprep.subr.bf16.mxu0 %v348_v0  ;;  %vm113_vm2 = vcmp.ge.s32.totalorder %v401_v15, 8  ;;  %vm114_vm3 = vcmp.lt.s32.totalorder %v401_v15, 16  ;;  %vm116_vm4 = vcmp.ge.s32.totalorder %v401_v15, 16  ;;  %vm117_vm5 = vcmp.lt.s32.totalorder %v401_v15, 24  ;;  %v334_v53 = vld [vmem:[%s513_s3] sm:$0xff]   ;;  %s353_s3 = smov 80  }
   0x5   :  { %vm119_vm6 = vcmp.ge.s32.totalorder %v401_v15, 24  ;;  %vm120_vm7 = vcmp.lt.s32.totalorder %v401_v15, 32  ;;  %vm412_vm8 = vmand %vm113_vm2, %vm114_vm3  ;;  %vm111_vm9 = vcmp.lt.s32.totalorder %v401_v15, 8  ;;  %317 = vmatpush3.bf16.msra.mxu1 %v334_v53 }
   0x6   :  { %vm417_vm10 = vmand %vm116_vm4, %vm117_vm5  ;;  %318 = vmatprep.subr.bf16.mxu1 %v348_v0 }
   0x7   :  { %311 = vmatpush3.bf16.msra.mxu0 %v333_v2  ;;  %vm421_vm11 = vmand %vm119_vm6, %vm120_vm7 }
   0x9   :  { %319 = vmatpush3.bf16.msra.mxu1 %v335_v54 }
   0xa   :  { %313 = vmatmul.mubr.msk.bf16.vlgmr.msra.gmra.mrb[0].mxu0 %vm40_vm1, %v27_v4 }
  0xdd   :  { %v78_v5 = vpop.f32.mrb[0].mxu0 }
  0xde   :  { %v84_v6 = vmax.f32 %v78_v5, 1e-15  ;;  %v314_v7 = vpop.f32.mrb[1].mxu0 }
  0xdf   :  { %v81_v8 = vpop.f32.mrb[2].mxu0 }
  0xe0   :  { %v85_v9 = vmin.f32 %v84_v6, 1e+15  ;;  %v315_v10 = vpop.f32.mrb[3].mxu0 }
  0xe2   :  { %336 = vlog2.f32 %v85_v9 }
  0xec   :  { %v337_v11 = vpop.eup %336 }
  0xed   :  { %v87_v12 = vmul.f32 0.6931472, %v337_v11 }
  0xef   :  { %97 = vrot.lane.b32.xlu1 %v87_v12, %s350_s1  ;;  %89 = vrot.lane.b32.xlu0 %v87_v12, %s351_s24 }
  0xf3   :  { %93 = vrot.lane.b32.xlu0 %v87_v12, %s352_s0 }
 0x161   :  { %v90_v14 = vpop.permute.xlu0 %89  ;;  %v98_v19 = vpop.permute.xlu1 %97 }
 0x162   :  { %v92_v16 = vadd.f32 %v90_v14, %v87_v12  ;;  %v301_v14 = vld [vmem:[%s514_s4] ss:$0 sm:$0xff] }
 0x165   :  { %v94_v17 = vpop.permute.xlu0 %93 }
 0x166   :  { %v96_v18 = vadd.f32 %v94_v17, %v92_v16 }
 0x168   :  { %v100_v21 = vadd.f32 %v98_v19, %v96_v18 }
 0x16a   :  { %v107_v23 = vadd.f32 %v297_v20, %v100_v21 }
 0x16c   :  { %v127_v26 = vsel %vm412_vm8, %v107_v23, -inf  ;;  %v122_v27 = vsel %vm111_vm9, %v107_v23, -inf  ;;  %v132_v30 = vsel %vm417_vm10, %v107_v23, -inf  ;;  %v137_v31 = vsel %vm421_vm11, %v107_v23, -inf }
 0x16d   :  { %v128_v28 = vsel %vm40_vm1, %v127_v26, -inf  ;;  %v123_v29 = vsel %vm40_vm1, %v122_v27, -inf  ;;  %v133_v32 = vsel %vm40_vm1, %v132_v30, -inf  ;;  %v138_v33 = vsel %vm40_vm1, %v137_v31, -inf }
 0x16e   :  { %129 = vmax.xlane.f32.xlu0 %v128_v28  ;;  %124 = vmax.xlane.f32.xlu1 %v123_v29 }
 0x172   :  { %134 = vmax.xlane.f32.xlu0 %v133_v32  ;;  %139 = vmax.xlane.f32.xlu1 %v138_v33 }
 0x1fb   :  { %v130_v34 = vpop.xlane.xlu0 %129  ;;  %v125_v35 = vpop.xlane.xlu1 %124 }
 0x1fc   :  { %v126_v36 = vsel %vm111_vm9, %v125_v35, 0.0 }
 0x1fd   :  { %v131_v37 = vsel %vm412_vm8, %v130_v34, %v126_v36 }
 0x1ff   :  { %v135_v38 = vpop.xlane.xlu0 %134  ;;  %v140_v39 = vpop.xlane.xlu1 %139 }
 0x200   :  { %v136_v40 = vsel %vm417_vm10, %v135_v38, %v131_v37 }
 0x201   :  { %v141_v41 = vsel %vm421_vm11, %v140_v39, %v136_v40 }
 0x202   :  { %v142_v42 = vsub.f32 %v107_v23, %v141_v41 }
 0x204   :  { %v143_v43 = vmul.f32 1.442695, %v142_v42 }
 0x206   :  { %338 = vpow2.f32 %v143_v43 }
 0x210   :  { %v339_v44 = vpop.eup %338 }
 0x211   :  { %v150_v45 = vsel %vm412_vm8, %v339_v44, 0.0  ;;  %v145_v46 = vsel %vm111_vm9, %v339_v44, 0.0  ;;  %v160_v49 = vsel %vm421_vm11, %v339_v44, 0.0  ;;  %v155_v50 = vsel %vm417_vm10, %v339_v44, 0.0 }
 0x212   :  { %v151_v47 = vsel %vm40_vm1, %v150_v45, 0.0  ;;  %v146_v48 = vsel %vm40_vm1, %v145_v46, 0.0  ;;  %v161_v51 = vsel %vm40_vm1, %v160_v49, 0.0  ;;  %v156_v52 = vsel %vm40_vm1, %v155_v50, 0.0 }
 0x213   :  { %152 = vadd.xlane.f32.xlu1 %v151_v47  ;;  %147 = vadd.xlane.f32.xlu0 %v146_v48 }
 0x217   :  { %162 = vadd.xlane.f32.xlu1 %v161_v51  ;;  %157 = vadd.xlane.f32.xlu0 %v156_v52 }
 0x2a0   :  { %v153_v55 = vpop.xlane.xlu1 %152  ;;  %v148_v56 = vpop.xlane.xlu0 %147 }
 0x2a1   :  { %v149_v57 = vsel %vm111_vm9, %v148_v56, 0.0 }
 0x2a2   :  { %v154_v58 = vsel %vm412_vm8, %v153_v55, %v149_v57 }
 0x2a4   :  { %v163_v59 = vpop.xlane.xlu1 %162  ;;  %v158_v60 = vpop.xlane.xlu0 %157 }
 0x2a5   :  { %v159_v61 = vsel %vm417_vm10, %v158_v60, %v154_v58 }
 0x2a6   :  { %v164_v62 = vsel %vm421_vm11, %v163_v59, %v159_v61 }
 0x2a7   :  { %340 = vrcp.f32 %v164_v62 }
 0x2b1   :  { %v341_v63 = vpop.eup %340 }
 0x2b2   :  { %v166_v0 = vmul.f32 %v341_v63, %v339_v44 }
 0x2b4   :  { %v172_v1 = vpack.c.bf16 %v166_v0, %v166_v0 }
 0x2b6   :  { %321 = vmatmul.mubr.msk.bf16.vlgmr.msra.gmra.mrb[0].mxu1 %vm40_vm1, %v172_v1 }
 0x389   :  { %v222_v2 = vpop.f32.mrb[0].mxu1 }
 0x38a   :  { %v228_v3 = vmax.f32 %v222_v2, 1e-15  ;;  %v322_v4 = vpop.f32.mrb[1].mxu1 }
 0x38b   :  { %v225_v5 = vpop.f32.mrb[2].mxu1 }
 0x38c   :  { %v229_v6 = vmin.f32 %v228_v3, 1e+15  ;;  %v323_v7 = vpop.f32.mrb[3].mxu1 }
 0x38e   :  { %342 = vlog2.f32 %v229_v6 }
 0x398   :  { %v343_v8 = vpop.eup %342 }
 0x399   :  { %v231_v9 = vmul.f32 0.6931472, %v343_v8 }
 0x39b   :  { %237 = vrot.lane.b32.xlu1 %v231_v9, %s353_s3  ;;  %233 = vrot.lane.b32.xlu0 %v231_v9, %s354_s30 }
 0x39f   :  { %241 = vrot.lane.b32.xlu1 %v231_v9, %s355_s6 }
 0x40d   :  { %v238_v10 = vpop.permute.xlu1 %237  ;;  %v234_v11 = vpop.permute.xlu0 %233 }
 0x40e   :  { %v236_v12 = vadd.f32 %v234_v11, %v231_v9 }
 0x410   :  { %v240_v13 = vadd.f32 %v238_v10, %v236_v12 }
 0x411   :  { %v242_v16 = vpop.permute.xlu1 %241 }
 0x412   :  { %v244_v17 = vadd.f32 %v242_v16, %v240_v13 }
 0x414   :  { %v251_v18 = vadd.f32 %v301_v14, %v244_v17 }
 0x416   :  { %v258_v19 = vsel %vm412_vm8, %v251_v18, -inf  ;;  %v252_v20 = vsel %vm111_vm9, %v251_v18, -inf  ;;  %v263_v25 = vsel %vm417_vm10, %v251_v18, -inf }
 0x417   :  { %v259_v21 = vsel %vm253_vm12, %v258_v19, -inf  ;;  %v254_v23 = vsel %vm253_vm12, %v252_v20, -inf  ;;  %v264_v26 = vsel %vm253_vm12, %v263_v25, -inf }
 0x418   :  { %260 = vmax.xlane.f32.xlu1 %v259_v21  ;;  %255 = vmax.xlane.f32.xlu0 %v254_v23 }
 0x41c   :  { %265 = vmax.xlane.f32.xlu0 %v264_v26 }
 0x4a5   :  { %v256_v27 = vpop.xlane.xlu0 %255  ;;  %v261_v28 = vpop.xlane.xlu1 %260 }
 0x4a6   :  { %v257_v29 = vsel %vm111_vm9, %v256_v27, 0.0 }
 0x4a7   :  { %v262_v30 = vsel %vm412_vm8, %v261_v28, %v257_v29 }
 0x4a9   :  { %v266_v31 = vpop.xlane.xlu0 %265 }
 0x4aa   :  { %v267_v32 = vsel %vm417_vm10, %v266_v31, %v262_v30 }
 0x4ab   :  { %v268_v33 = vsub.f32 %v251_v18, %v267_v32 }
 0x4ad   :  { %v269_v34 = vmul.f32 1.442695, %v268_v33 }
 0x4af   :  { %344 = vpow2.f32 %v269_v34 }
 0x4b9   :  { %v345_v35 = vpop.eup %344 }
 0x4ba   :  { %v276_v36 = vsel %vm412_vm8, %v345_v35, 0.0  ;;  %v271_v37 = vsel %vm111_vm9, %v345_v35, 0.0  ;;  %v281_v40 = vsel %vm417_vm10, %v345_v35, 0.0 }
 0x4bb   :  { %v277_v38 = vsel %vm253_vm12, %v276_v36, 0.0  ;;  %v272_v39 = vsel %vm253_vm12, %v271_v37, 0.0  ;;  %v282_v41 = vsel %vm253_vm12, %v281_v40, 0.0 }
 0x4bc   :  { %278 = vadd.xlane.f32.xlu1 %v277_v38  ;;  %273 = vadd.xlane.f32.xlu0 %v272_v39 }
 0x4c0   :  { %283 = vadd.xlane.f32.xlu0 %v282_v41 }
 0x549   :  { %v274_v42 = vpop.xlane.xlu0 %273  ;;  %v279_v43 = vpop.xlane.xlu1 %278 }
 0x54a   :  { %v275_v44 = vsel %vm111_vm9, %v274_v42, 0.0 }
 0x54b   :  { %v280_v45 = vsel %vm412_vm8, %v279_v43, %v275_v44 }
 0x54d   :  { %v284_v46 = vpop.xlane.xlu0 %283 }
 0x54e   :  { %v285_v47 = vsel %vm417_vm10, %v284_v46, %v280_v45 }
 0x54f   :  { %346 = vrcp.f32 %v285_v47 }
 0x559   :  { %v347_v48 = vpop.eup %346 }
 0x55a   :  { %v287_v49 = vmul.f32 %v347_v48, %v345_v35 }
 0x55c   :  { %v288_v50 = vsel %vm253_vm12, %v287_v49, 0.0 }
 0x55d   :  { %289 = vst [vmem:[%s515_s5] sm:$0xff] %v288_v50 }

</bundles_post_ra>
